<compile_context>
chip_gen: v6e
topology: v6e:2x2x1
jax: 0.10.0
libtpu: 0.0.40
codegen_flags: <defaults>
</compile_context>

<pallas_src>
import functools
import math

import jax
import jax.numpy as jnp
from jax.experimental import pallas as pl
from jax.experimental.pallas import tpu as pltpu


def _round_up(x: int, m: int) -> int:
    return (x + m - 1) // m * m


def _stable_softplus(x):
    # softplus(x) = max(x, 0) + log1p(exp(-|x|)); no overflow for large rho.
    return jnp.maximum(x, 0.0) + jnp.log1p(jnp.exp(-jnp.abs(x)))


def bayes_linear_kernel(x_ref, mu_ref, rho_ref, eps_ref, o_ref, acc_ref,
                        *, mxu_dtype):
    k = pl.program_id(2)

    @pl.when(k == 0)
    def _():
        acc_ref[...] = jnp.zeros_like(acc_ref)

    # Reparameterized weight tile, built in f32.
    # TODO(synk): generate eps on-chip (pltpu.prng_seed + stateful_normal) to
    # cut HBM weight-stream traffic by ~1/3; kept as an explicit input here so
    # the host-side reference check is exact.
    sigma = _stable_softplus(rho_ref[...])           # [tn, tk] f32
    w = mu_ref[...] + sigma * eps_ref[...]           # [tn, tk] f32

    x = x_ref[...]                                   # [tm, tk]
    if mxu_dtype is not None:
        x = x.astype(mxu_dtype)
        w = w.astype(mxu_dtype)

    # Contract last dims of both operands: (tm, tk) x (tn, tk) -> (tm, tn).
    acc_ref[...] += jax.lax.dot_general(
        x, w,
        dimension_numbers=(((1,), (1,)), ((), ())),
        preferred_element_type=jnp.float32,
    )

    @pl.when(k == pl.num_programs(2) - 1)
    def _():
        o_ref[...] = acc_ref[...].astype(o_ref.dtype)


def bayes_linear_mixture_forward(x, weight_mu, weight_rho, eps, *,
                                 tm=128, tn=256, tk=512,
                                 mxu_dtype=jnp.bfloat16):
    """x: [B, in], weight_mu/rho/eps: [out, in] -> [B, out]."""
    B, In = x.shape
    Out, In2 = weight_mu.shape
    assert In == In2
    assert weight_rho.shape == (Out, In) and eps.shape == (Out, In)

    # Clamp tile sizes to the (aligned) problem and pad to tile multiples.
    tm = min(tm, _round_up(B, 8))
    tn = min(tn, _round_up(Out, 128))
    tk = min(tk, _round_up(In, 128))
    Bp, Op, Ip = _round_up(B, tm), _round_up(Out, tn), _round_up(In, tk)

    xp = jnp.pad(x, ((0, Bp - B), (0, Ip - In)))
    mup = jnp.pad(weight_mu, ((0, Op - Out), (0, Ip - In)))
    rhop = jnp.pad(weight_rho, ((0, Op - Out), (0, Ip - In)))
    epsp = jnp.pad(eps, ((0, Op - Out), (0, Ip - In)))

    grid = (Bp // tm, Op // tn, Ip // tk)
    w_map = lambda i, j, k: (j, k)

    cost = pl.CostEstimate(
        flops=2 * Bp * Ip * Op,
        transcendentals=2 * Op * Ip,                 # exp + log1p per weight
        bytes_accessed=(3 * Op * Ip + Bp * Ip + Bp * Op) * 4,
    )

    out_p = pl.pallas_call(
        functools.partial(bayes_linear_kernel, mxu_dtype=mxu_dtype),
        out_shape=jax.ShapeDtypeStruct((Bp, Op), x.dtype),
        grid_spec=pltpu.PrefetchScalarGridSpec(
            num_scalar_prefetch=0,
            grid=grid,
            in_specs=[
                pl.BlockSpec((tm, tk), lambda i, j, k: (i, k)),   # x
                pl.BlockSpec((tn, tk), w_map),                    # weight_mu
                pl.BlockSpec((tn, tk), w_map),                    # weight_rho
                pl.BlockSpec((tn, tk), w_map),                    # eps
            ],
            out_specs=pl.BlockSpec((tm, tn), lambda i, j, k: (i, j)),
            scratch_shapes=[pltpu.VMEM((tm, tn), jnp.float32)],
        ),
        compiler_params=pltpu.CompilerParams(
            dimension_semantics=("parallel", "parallel", "arbitrary"),
        ),
        cost_estimate=cost,
    )(xp, mup, rhop, epsp)

    return out_p[:B, :Out]


if __name__ == "__main__":
    # Module hyperparameters (matching BayesLinearMixture.__init__).
    prior_mu1, prior_sigma1 = 0.0, 0.1
    prior_mu2, prior_sigma2 = 0.0, 0.001
    pi = 0.5
    in_features, out_features = 384, 320
    batch = 20

    prior_log_sigma1 = math.log(prior_sigma1)

    key = jax.random.PRNGKey(0)
    k_x, k_mu, k_eps = jax.random.split(key, 3)

    # Deterministic parameter init (mirrors reset_parameters).
    stdv = 1.0 / math.sqrt(in_features)
    weight_mu = jax.random.uniform(
        k_mu, (out_features, in_features), jnp.float32, minval=-stdv, maxval=stdv
    )
    weight_rho = jnp.full((out_features, in_features), prior_log_sigma1,
                          jnp.float32)

    # eps ~ N(0, 1) is drawn per forward call in PyTorch; drawn host-side here
    # so the reference check is exact.
    eps = jax.random.normal(k_eps, (out_features, in_features), jnp.float32)
    x = jax.random.normal(k_x, (batch, in_features), jnp.float32)

    # Small tiles so the test exercises all three grid axes, the K-reduction
    # accumulator, and the padding/slicing path.
    out = bayes_linear_mixture_forward(x, weight_mu, weight_rho, eps,
                                       tm=16, tn=128, tk=128)
    out = jax.block_until_ready(out)

    # Reference in plain JAX (same bf16-at-the-MXU cast, f32 accumulation).
    w_ref = weight_mu + _stable_softplus(weight_rho) * eps
    ref = jax.lax.dot_general(
        x.astype(jnp.bfloat16), w_ref.astype(jnp.bfloat16),
        dimension_numbers=(((1,), (1,)), ((), ())),
        preferred_element_type=jnp.float32,
    ).astype(x.dtype)

    assert out.shape == (batch, out_features)
    assert jnp.allclose(out, ref, atol=1e-2, rtol=1e-2), (
        float(jnp.max(jnp.abs(out - ref))))
    print("KERNEL_OK")
</pallas_src>

<mosaic_0001>
module attributes {stable_mosaic.version = 11 : i64} {
  func.func @bayes_linear_kernel(%arg0: i32, %arg1: i32, %arg2: i32, %arg3: memref<16x128xf32, #tpu.memory_space<vmem>>, %arg4: memref<128x128xf32, #tpu.memory_space<vmem>>, %arg5: memref<128x128xf32, #tpu.memory_space<vmem>>, %arg6: memref<128x128xf32, #tpu.memory_space<vmem>>, %arg7: memref<16x128xf32, #tpu.memory_space<vmem>>, %arg8: memref<16x128xf32, #tpu.memory_space<vmem>>) attributes {dimension_semantics = [#tpu.dimension_semantics<parallel>, #tpu.dimension_semantics<parallel>, #tpu.dimension_semantics<arbitrary>], iteration_bounds = array<i64: 2, 3, 3>, scalar_prefetch = 0 : i64, scratch_operands = 1 : i64, tpu.core_type = #tpu.core_type<tc>, window_params = [{transform_indices = @transform_0, window_bounds = array<i64: 16, 128>}, {transform_indices = @transform_1, window_bounds = array<i64: 128, 128>}, {transform_indices = @transform_2, window_bounds = array<i64: 128, 128>}, {transform_indices = @transform_3, window_bounds = array<i64: 128, 128>}, {transform_indices = @transform_4, window_bounds = array<i64: 16, 128>}]} {
    %c0_i32 = arith.constant 0 : i32
    %0 = arith.cmpi eq, %arg2, %c0_i32 : i32
    %1 = arith.extui %0 : i1 to i32
    %c0_i32_0 = arith.constant 0 : i32
    %2 = arith.cmpi ne, %1, %c0_i32_0 : i32
    scf.if %2 {
      %cst_15 = arith.constant 0.000000e+00 : f32
      %26 = vector.broadcast %cst_15 : f32 to vector<16x128xf32>
      %c0_16 = arith.constant 0 : index
      %c0_17 = arith.constant 0 : index
      %27 = vector.load %arg8[%c0_16, %c0_17] : memref<16x128xf32, #tpu.memory_space<vmem>>, vector<16x128xf32>
      tpu.vector_store %arg8[%c0_16, %c0_17], %26 {strides = array<i32>} : memref<16x128xf32, #tpu.memory_space<vmem>>, vector<16x128xf32>,
    } else {
    }
    %c0 = arith.constant 0 : index
    %c0_1 = arith.constant 0 : index
    %3 = vector.load %arg5[%c0, %c0_1] : memref<128x128xf32, #tpu.memory_space<vmem>>, vector<128x128xf32>
    %cst = arith.constant 0.000000e+00 : f32
    %4 = vector.broadcast %cst : f32 to vector<128x128xf32>
    %5 = arith.maximumf %3, %4 : vector<128x128xf32>
    %6 = math.absf %3 : vector<128x128xf32>
    %cst_2 = arith.constant 0.000000e+00 : f32
    %7 = vector.broadcast %cst_2 : f32 to vector<128x128xf32>
    %8 = arith.subf %7, %6 : vector<128x128xf32>
    %9 = math.exp %8 : vector<128x128xf32>
    %10 = math.log1p %9 : vector<128x128xf32>
    %11 = arith.addf %5, %10 : vector<128x128xf32>
    %c0_3 = arith.constant 0 : index
    %c0_4 = arith.constant 0 : index
    %12 = vector.load %arg4[%c0_3, %c0_4] : memref<128x128xf32, #tpu.memory_space<vmem>>, vector<128x128xf32>
    %c0_5 = arith.constant 0 : index
    %c0_6 = arith.constant 0 : index
    %13 = vector.load %arg6[%c0_5, %c0_6] : memref<128x128xf32, #tpu.memory_space<vmem>>, vector<128x128xf32>
    %14 = arith.mulf %11, %13 : vector<128x128xf32>
    %15 = arith.addf %12, %14 : vector<128x128xf32>
    %c0_7 = arith.constant 0 : index
    %c0_8 = arith.constant 0 : index
    %16 = vector.load %arg3[%c0_7, %c0_8] : memref<16x128xf32, #tpu.memory_space<vmem>>, vector<16x128xf32>
    %17 = arith.truncf %16 : vector<16x128xf32> to vector<16x128xbf16>
    %18 = arith.truncf %15 : vector<128x128xf32> to vector<128x128xbf16>
    %c0_9 = arith.constant 0 : index
    %c0_10 = arith.constant 0 : index
    %19 = vector.load %arg8[%c0_9, %c0_10] : memref<16x128xf32, #tpu.memory_space<vmem>>, vector<16x128xf32>
    %cst_11 = arith.constant dense<0.000000e+00> : vector<16x128xf32>
    %20 = tpu.matmul %17, %18, %cst_11 {dimension_numbers = #tpu.dot_dimension_numbers<[1], [1], [0], [0], [0, 0, 1, 0], [], []>} : vector<16x128xbf16>, vector<128x128xbf16>, vector<16x128xf32> -> vector<16x128xf32>
    %21 = arith.addf %19, %20 : vector<16x128xf32>
    %c0_12 = arith.constant 0 : index
    %c0_13 = arith.constant 0 : index
    %22 = vector.load %arg8[%c0_12, %c0_13] : memref<16x128xf32, #tpu.memory_space<vmem>>, vector<16x128xf32>
    tpu.vector_store %arg8[%c0_12, %c0_13], %21 {strides = array<i32>} : memref<16x128xf32, #tpu.memory_space<vmem>>, vector<16x128xf32>,
    %c2_i32 = arith.constant 2 : i32
    %23 = arith.cmpi eq, %arg2, %c2_i32 : i32
    %24 = arith.extui %23 : i1 to i32
    %c0_i32_14 = arith.constant 0 : i32
    %25 = arith.cmpi ne, %24, %c0_i32_14 : i32
    scf.if %25 {
      %c0_15 = arith.constant 0 : index
      %c0_16 = arith.constant 0 : index
      %26 = vector.load %arg8[%c0_15, %c0_16] : memref<16x128xf32, #tpu.memory_space<vmem>>, vector<16x128xf32>
      %c0_17 = arith.constant 0 : index
      %c0_18 = arith.constant 0 : index
      %27 = vector.load %arg7[%c0_17, %c0_18] : memref<16x128xf32, #tpu.memory_space<vmem>>, vector<16x128xf32>
      tpu.vector_store %arg7[%c0_17, %c0_18], %26 {strides = array<i32>} : memref<16x128xf32, #tpu.memory_space<vmem>>, vector<16x128xf32>,
    } else {
    }
    return
  }
  func.func @transform_0(%arg0: i32, %arg1: i32, %arg2: i32) -> (i32, i32) {
    %c0_i32 = arith.constant 0 : i32
    return %arg0, %arg2 : i32, i32
  }
  func.func @transform_1(%arg0: i32, %arg1: i32, %arg2: i32) -> (i32, i32) {
    %c0_i32 = arith.constant 0 : i32
    return %arg1, %arg2 : i32, i32
  }
  func.func @transform_2(%arg0: i32, %arg1: i32, %arg2: i32) -> (i32, i32) {
    %c0_i32 = arith.constant 0 : i32
    return %arg1, %arg2 : i32, i32
  }
  func.func @transform_3(%arg0: i32, %arg1: i32, %arg2: i32) -> (i32, i32) {
    %c0_i32 = arith.constant 0 : i32
    return %arg1, %arg2 : i32, i32
  }
  func.func @transform_4(%arg0: i32, %arg1: i32, %arg2: i32) -> (i32, i32) {
    %c0_i32 = arith.constant 0 : i32
    return %arg0, %arg1 : i32, i32
  }
}

</mosaic_0001>

<bundles_post_ra>
// kernel: tpu_custom_call.1
= control target key start
LH: loop header
LB: loop body
LE: loop exit
PB: predicated region body
PF: predicated region fallthrough
CT: control target
= control target key end

     0   :  { %s2235_s0 = inlined_call_operand.hbm [shape: f32[32,384], index: 0, kind: input, shape index: {}]   ;;  %s2236_s1 = inlined_call_operand.hbm [shape: f32[384,384], index: 1, kind: input, shape index: {}]   ;;  %s2237_s2 = inlined_call_operand.hbm [shape: f32[384,384], index: 2, kind: input, shape index: {}]   ;;  %s2238_s3 = inlined_call_operand.hbm [shape: f32[384,384], index: 3, kind: input, shape index: {}]   ;;  %s2239_s4 = inlined_call_operand.hbm [shape: f32[32,384], index: 4, kind: output, shape index: {}]  }
   0x1   :  { %2265 = sst [smem:[#allocation34_spill]] %s2235_s0 }
   0x2   :  { %2266 = sst [smem:[#allocation35_spill]] %s2236_s1 }
   0x3   :  { %2267 = sst [smem:[#allocation36_spill]] %s2237_s2 }
   0x4   :  { %2268 = sst [smem:[#allocation37_spill]] %s2238_s3 }
   0x5   :  { %2269 = sst [smem:[#allocation38_spill]] %s2239_s4 }
   0x6   :  { %9 = vsyncpa [#allocation4], 0 }
   0x7   :  { %11 = vsyncpa [#allocation4 + $0x1], 0 }
   0x8   :  { %12 = vsyncpa [#allocation7], 0 }
   0x9   :  { %14 = vsyncpa [#allocation7 + $0x1], 0 }
   0xa   :  { %15 = vsyncpa [#allocation10], 0 }
   0xb   :  { %17 = vsyncpa [#allocation10 + $0x1], 0 }
   0xc   :  { %18 = vsyncpa [#allocation5], 0 }
   0xd   :  { %20 = vsyncpa [#allocation5 + $0x1], 0  ;;  %s1569_s15 = smov 0   ;;  %s1571_s16 = smov 0  }
   0xe   :  { %s1573_s17 = smov 0   ;;  %s1575_s18 = smov 0  }
   0xf   :  { %s1577_s19 = smov 0   ;;  %s1579_s20 = smov 0  }
  0x10   :  { %s1581_s21 = smov 0   ;;  %s1583_s22 = smov 0  }
  0x11   :  { %s1585_s23 = smov 0   ;;  %s1587_s24 = smov 0  }
  0x12   :  { %s1589_s25 = smov 0   ;;  %s1591_s26 = smov 0  }
  0x13   :  { %s1593_s27 = smov 0   ;;  %s1595_s28 = smov 0  }
  0x14   :  { %s1597_s29 = smov 0   ;;  %s1599_s30 = smov 0  }
  0x15 LB: > { %2270 = sst [smem:[#allocation16_spill]] %s1468_s15  ;;  %s38_s5 = sadd.s32 1, %s1516_s27  ;;  %s1528_s30 = sphi %s1599_s30, %s26_s30   ;;  %s1524_s29 = sphi %s1597_s29, %s2359_s29   ;;  %s1520_s28 = sphi %s1595_s28, %s2358_s28   ;;  %s1516_s27 = sphi %s1593_s27, %s2357_s27   ;;  %s1512_s26 = sphi %s1591_s26, %s2369_s26   ;;  %s1508_s25 = sphi %s1589_s25, %s2368_s25   ;;  %s1504_s24 = sphi %s1587_s24, %s2367_s24   ;;  %s1500_s23 = sphi %s1585_s23, %s2353_s23   ;;  %s1496_s22 = sphi %s1583_s22, %s2366_s22   ;;  %s1492_s21 = sphi %s1581_s21, %s2365_s21   ;;  %s1488_s20 = sphi %s1579_s20, %s2364_s20   ;;  %s1484_s19 = sphi %s1577_s19, %s2363_s19   ;;  %s1480_s18 = sphi %s1575_s18, %s2362_s18   ;;  %s1476_s17 = sphi %s1573_s17, %s2350_s17   ;;  %s1472_s16 = sphi %s1571_s16, %s2361_s16   ;;  %s1468_s15 = sphi %s1569_s15, %s2348_s15  }
  0x16   : > { %2271 = sst [smem:[#allocation17_spill]] %s1472_s16  ;;  %s41_s6 = sadd.s32 1, %s1520_s28 }
  0x17   : > { %2272 = sst [smem:[#allocation18_spill]] %s1476_s17  ;;  %p39_p0 = scmp.ge.s32.totalorder %s38_s5, 3 }
  0x18   : > { %2273 = sst [smem:[#allocation19_spill]] %s1500_s23  ;;  %p62_p1 = scmp.eq.s32.totalorder %s1528_s30, 0 }
  0x19   : > { %2274 = sst [smem:[#allocation20_spill]] %s1504_s24  ;;  %s82_s7 = sadd.s32 1, %s1488_s20 }
  0x1a   : > { %2275 = sst [smem:[#allocation21_spill]] %s1508_s25  ;;  %p89_p2 = scmp.ne.s32.totalorder %s1488_s20, %s1484_s19 }
  0x1b   : > { %2276 = sst [smem:[#allocation22_spill]] %s1512_s26  ;;  %s2371_s5 = smov (%p39_p0, %s38_s5), 0 }
  0x1c   : > { %2277 = sst [smem:[#allocation23_spill]] %s1516_s27  ;;  %s2373_s6 = smov (!%p39_p0, %s41_s6), %s1520_s28 }
  0x1d   : > { %2278 = sst [smem:[#allocation24_spill]] %s1520_s28  ;;  %s1662_s8 = ssub.s32 %s1516_s27, %s2371_s5 }
  0x1e   : > { %2279 = sst [smem:[#allocation25_spill]] %s1524_s29  ;;  %p1666_p3 = por %p89_p2, %p62_p1 }
  0x1f   : > { %2280 = sst [smem:[#allocation26_spill]] %s2371_s5  ;;  %p43_p4 = scmp.ge.s32.totalorder %s2373_s6, 3 }
  0x20   : > { %p95_p5 = scmp.ne.s32.totalorder %s1484_s19, %s1480_s18  ;;  %p2244_p6 = scmp.lt.s32.totalorder %s1528_s30, 18 }
  0x21   : > { %s1677_s10 = scalar_select %p43_p4, 0, %s2373_s6  }
  0x22   : > { %s226_s13 = sand.u32 1, %s1528_s30   ;;  %s2245_s14 = sand.u32 1, %s1488_s20  }
  0x23   : > { %2282 = sst [smem:[#allocation27_spill]] %s1677_s10  ;;  %s1681_s11 = ssub.s32 %s1520_s28, %s1677_s10 }
  0x24   : > { %s79_s12 = sor.u32 %s1681_s11, %s1662_s8  ;;  %s1014_s5 = smul.u32 48, %s1520_s28 }
  0x25   : > { %p80_p7 = scmp.eq.s32.totalorder %s79_s12, 0  ;;  %s1693_s25 = sshll.u32 %s2245_s14, 7 }
  0x26   : > { %s236_s26 = sadd.s32 %s1516_s27, %s1014_s5  ;;  %s2284_s1 = sld [smem:[#allocation35_spill]] }
  0x27   : > { %s1689_s4 = scalar_select %p80_p7, %s1488_s20, %s82_s7  }
  0x28   : > { %s1696_s24 = sshll.u32 %s236_s26, 7  ;;  %s230_s0 = scalar_lea.vmem [#allocation6], %s1693_s25 }
  0x29   : > { %2283 = sst [smem:[#allocation28_spill]] %s1689_s4  ;;  %s239_s15 = sshll.u32 %s230_s0, 4  ;;  %s240_s15 = int_to_ptr.vmem [resolvable:$true] %s239_s15 }
  0x2a   : > { %p1707_p8 = pnand %p2244_p6, %p1666_p3  ;;  %p970_p9 = scmp.ge.s32.totalorder %s1528_s30, 1 }
  0x2b   : > { %p293_p10 = scmp.lt.s32.totalorder %s1528_s30, 19  ;;  %s1713_s26 = scalar_lea.sflag [#allocation7], %s226_s13 }
  0x2c   : > { %s238_s2 = scalar_lea.hbm %s2284_s1, %s1696_s24  ;;  %p2263_p11 = pneg %p1707_p8 }
  0x2d   : > { %s1261_s5 = scalar_lea.vmem %s240_s15, 2048  ;;  %s1530_s0 = smov [#allocation6]  }
  0x2e   : > { %p1262_p12 = scmp.ne.s32.totalorder %s240_s15, %s1261_s5  ;;  %s1266_s3 = sshll.u32 %s1530_s0, 4  ;;  %s1267_s3 = int_to_ptr.vmem [resolvable:$false] %s1266_s3 }
  0x2f   : > { %s1268_s9 = scalar_lea.vmem %s1267_s3, 4096  ;;  %p1269_p2 = scmp.lt.s32.totalorder %s240_s15, %s1267_s3 }
  0x30   : > { %p1264_p13 = pnand %p1262_p12, %p2263_p11  ;;  %p1270_p3 = scmp.lt.s32.totalorder %s1268_s9, %s1261_s5 }
  0x32   : > { %p1265_p0 = pneg %p1264_p13  ;;  %p1271_p7 = por %p1270_p3, %p1269_p2 }
  0x34   : > { %p1272_p6 = pnand %p1271_p7, %p1265_p0 }
  0x36   : > { %1275 = shalt.err (!%p1272_p6)
}
  0x37   : > { %s2246_s10 = smov 384   ;;  %s2248_s12 = smov 128  }
  0x38   : > { %s2250_s13 = smov 8   ;;  %p1735_p6 = pnand %p970_p9, %p293_p10 }
  0x39   : > { %1034 = dma.hbm_to_vmem [thread:$0]  (!%p1707_p8), %s238_s2, 2048, %s240_s15, %s1713_s26, %s2246_s10, %s2248_s12, %s2250_s13  }
  0x3a   : > { %s1740_s9 = sadd.s32 4294967295, %s1528_s30   ;;  %s951_s14 = sadd.s32 4294967294, %s1528_s30  }
  0x3b   : > { %s45_s5 = sadd.s32 1, %s1524_s29  ;;  %s54_s0 = sadd.s32 1, %s1500_s23 }
  0x3c   : > { %s2375_s5 = smov (!%p43_p4, %s45_s5), %s1524_s29  ;;  %p61_p12 = scmp.ne.s32.totalorder %s1500_s23, %s1496_s22 }
  0x3d   : > { %s2287_s2 = sld [smem:[#allocation16_spill]]  ;;  %p67_p9 = scmp.ne.s32.totalorder %s1496_s22, %s1492_s21 }
  0x3e   : > { %p47_p10 = scmp.ge.s32.totalorder %s2375_s5, 2  ;;  %p68_p13 = scmp.eq.s32.totalorder %s1740_s9, 0 }
  0x3f   : > { %p1755_p0 = por %p62_p1, %p61_p12  ;;  %s166_s10 = sadd.s32 1, %s1476_s17 }
  0x40   : > { %s2377_s5 = smov (%p47_p10, %s2375_s5), 0  ;;  %p1762_p4 = por %p68_p13, %p67_p9 }
  0x41   : > { %2289 = sst [smem:[#allocation29_spill]] %s2377_s5  ;;  %p1769_p2 = por %p95_p5, %p68_p13 }
  0x42   : > { %s49_s12 = ssub.s32 %s1524_s29, %s2377_s5  ;;  %p176_p1 = scmp.ne.s32.totalorder %s1476_s17, %s1472_s16 }
  0x43   : > { %s51_s13 = sor.u32 %s1662_s8, %s49_s12  ;;  %s163_s1 = sor.u32 %s1681_s11, %s49_s12 }
  0x44   : > { %p52_p3 = scmp.eq.s32.totalorder %s51_s13, 0  ;;  %p164_p7 = scmp.eq.s32.totalorder %s163_s1, 0 }
  0x45   : > { %p177_p12 = scmp.eq.s32.totalorder %s1740_s9, 17  ;;  %p182_p10 = scmp.ne.s32.totalorder %s1472_s16, %s2287_s2 }
  0x46   : > { %s1783_s28 = scalar_select %p52_p3, %s1500_s23, %s54_s0  }
  0x47   : > { %s1786_s18 = scalar_select %p164_p7, %s1476_s17, %s166_s10  }
  0x48   : > { %2292 = sst [smem:[#allocation30_spill]] %s1783_s28  ;;  %p1788_p5 = por %p177_p12, %p176_p1 }
  0x49   : > { %2293 = sst [smem:[#allocation31_spill]] %s1786_s18  ;;  %p183_p9 = scmp.eq.s32.totalorder %s951_s14, 17 }
  0x4a   : > { %s2294_s4 = scalar_select %p1788_p5, 1, 0 }
  0x4b   : > { %s203_s5 = sand.u32 1, %s1500_s23   ;;  %s1013_s8 = smul.u32 6, %s1524_s29 }
  0x4c   : > { %2295 = sst [smem:[#allocation32_spill]] %s2294_s4  ;;  %p1794_p13 = por %p183_p9, %p182_p10 }
  0x4d   : > { %s954_s1 = sshll.u32 %s203_s5, 4  ;;  %s213_s12 = sadd.s32 %s1516_s27, %s1013_s8 }
  0x4e   : > { %s2296_s11 = scalar_select %p1794_p13, 1, 0 }
  0x4f   : > { %s957_s13 = sshll.u32 %s213_s12, 7  ;;  %s2298_s28 = sld [smem:[#allocation34_spill]] }
  0x50   : > { %2297 = sst [smem:[#allocation33_spill]] %s2296_s11  ;;  %s207_s10 = scalar_lea.vmem [#allocation3], %s954_s1 }
  0x51   : > { %s216_s18 = sshll.u32 %s207_s10, 4  ;;  %p2299_p1 = scmp.lt.s32.totalorder %s1528_s30, 18  ;;  %s217_s18 = int_to_ptr.vmem [resolvable:$true] %s216_s18 }
  0x52   : > { %s2301_s17 = sld [smem:[#allocation36_spill]]  ;;  %s253_s8 = scalar_lea.vmem [#allocation8], %s1693_s25 }
  0x53   : > { %p1806_p3 = pnand %p2299_p1, %p1755_p0  ;;  %s262_s12 = sshll.u32 %s253_s8, 4  ;;  %s263_s12 = int_to_ptr.vmem [resolvable:$true] %s262_s12 }
  0x54   : > { %s204_s27 = scalar_lea.sflag [#allocation4], %s203_s5  ;;  %s1534_s15 = smov [#allocation3]  }
  0x55   : > { %s215_s16 = scalar_lea.hbm %s2298_s28, %s957_s13  ;;  %p1278_p7 = pneg %p1806_p3 }
  0x56   : > { %s1289_s28 = scalar_lea.vmem %s217_s18, 256  ;;  %s1294_s1 = sshll.u32 %s1534_s15, 4  ;;  %s1295_s1 = int_to_ptr.vmem [resolvable:$false] %s1294_s1 }
  0x57   : > { %p1290_p12 = scmp.ne.s32.totalorder %s217_s18, %s1289_s28  ;;  %s1296_s13 = scalar_lea.vmem %s1295_s1, 512 }
  0x58   : > { %s261_s11 = scalar_lea.hbm %s2301_s17, %s1696_s24  ;;  %p1297_p0 = scmp.lt.s32.totalorder %s217_s18, %s1295_s1 }
  0x59   : > { %p1292_p10 = pnand %p1290_p12, %p1278_p7  ;;  %p1298_p1 = scmp.lt.s32.totalorder %s1296_s13, %s1289_s28 }
  0x5b   : > { %p1293_p9 = pneg %p1292_p10  ;;  %p1299_p11 = por %p1298_p1, %p1297_p0 }
  0x5d   : > { %p1300_p13 = pnand %p1299_p11, %p1293_p9 }
  0x5f   : > { %1303 = shalt.err (!%p1300_p13)
}
  0x60   : > { %s2303_s17 = smov 8   ;;  %s2304_s23 = smov 128  }
  0x61   : > { %s2305_s29 = smov 384   ;;  %s1317_s5 = scalar_lea.vmem %s263_s12, 2048 }
  0x62   : > { %1031 = dma.hbm_to_vmem [thread:$0]  (!%p1806_p3), %s215_s16, 256, %s217_s18, %s204_s27, %s2305_s29, %s2304_s23, %s2303_s17  }
  0x63   : > { %p1318_p7 = scmp.ne.s32.totalorder %s263_s12, %s1317_s5  ;;  %p2306_p12 = pneg %p1707_p8 }
  0x64   : > { %s1535_s2 = smov [#allocation8]  }
  0x65   : > { %p1320_p10 = pnand %p1318_p7, %p2306_p12  ;;  %s1322_s0 = sshll.u32 %s1535_s2, 4  ;;  %s1323_s0 = int_to_ptr.vmem [resolvable:$false] %s1322_s0 }
  0x66   : > { %s1324_s10 = scalar_lea.vmem %s1323_s0, 4096  ;;  %p1325_p11 = scmp.lt.s32.totalorder %s263_s12, %s1323_s0 }
  0x67   : > { %p1321_p5 = pneg %p1320_p10  ;;  %p1326_p13 = scmp.lt.s32.totalorder %s1324_s10, %s1317_s5 }
  0x69   : > { %p1327_p9 = por %p1326_p13, %p1325_p11 }
  0x6b   : > { %p1328_p0 = pnand %p1327_p9, %p1321_p5 }
  0x6d   : > { %1331 = shalt.err (!%p1328_p0)
}
  0x6e   : > { %1037 = dma.hbm_to_vmem [thread:$0]  (!%p1707_p8), %s261_s11, 2048, %s263_s12, %s1713_s26, %s2305_s29, %s2304_s23, %s2303_s17  }
  0x6f   : > { %s2307_s8 = sld [smem:[#allocation37_spill]]  ;;  %s276_s15 = scalar_lea.vmem [#allocation9], %s1693_s25 }
  0x70   : > { %s285_s1 = sshll.u32 %s276_s15, 4  ;;  %s2308_s13 = sand.u32 1, %s1488_s20   ;;  %s286_s1 = int_to_ptr.vmem [resolvable:$true] %s285_s1 }
  0x71   : > { %s273_s5 = scalar_lea.sflag [#allocation10], %s2308_s13  ;;  %s1345_s2 = scalar_lea.vmem %s286_s1, 2048 }
  0x72   : > { %p1346_p5 = scmp.ne.s32.totalorder %s286_s1, %s1345_s2  ;;  %p2309_p3 = pmov %p2306_p12 }
  0x73   : > { %s1536_s0 = smov [#allocation9]  }
  0x74   : > { %p1348_p1 = pnand %p1346_p5, %p2309_p3  ;;  %s1350_s10 = sshll.u32 %s1536_s0, 4  ;;  %s1351_s10 = int_to_ptr.vmem [resolvable:$false] %s1350_s10 }
  0x75   : > { %s284_s28 = scalar_lea.hbm %s2307_s8, %s1696_s24  ;;  %s1352_s16 = scalar_lea.vmem %s1351_s10, 4096 }
  0x76   : > { %p1349_p7 = pneg %p1348_p1  ;;  %p1353_p12 = scmp.lt.s32.totalorder %s286_s1, %s1351_s10 }
  0x77   : > { %p1354_p10 = scmp.lt.s32.totalorder %s1352_s16, %s1345_s2 }
  0x79   : > { %p1355_p11 = por %p1354_p10, %p1353_p12 }
  0x7b   : > { %p1356_p13 = pnand %p1355_p11, %p1349_p7 }
  0x7d   : > { %1359 = shalt.err (!%p1356_p13)
}
  0x7e   : > { %1040 = dma.hbm_to_vmem [thread:$0]  (!%p1707_p8), %s284_s28, 2048, %s286_s1, %s273_s5, %s2305_s29, %s2304_s23, %s2303_s17  }
  0x7f   : > { %297 = sbr.rel (%p1735_p6) target bundleno = 506 (0x1fa), region = 36  ;;  %s299_s24 = sand.u32 (!%p1735_p6), 1, %s1496_s22  }
  0x80   : > { %s1854_s25 = sshll.u32 (!%p1735_p6), %s299_s24, 4  ;;  %s300_s26 = scalar_lea.sflag (!%p1735_p6), [#allocation4], %s299_s24 }
  0x81   : > { %s303_s11 = scalar_lea.vmem (!%p1735_p6), [#allocation3], %s1854_s25 }
  0x84   : > { %1451 = dma.done.wait (%p1762_p4), %s300_s26, 256  }
  0x85   : > { %1453 = vsyncadd (%p1762_p4), %s300_s26, 4294967040  ;;  %s308_s7 = sand.u32 1, %s1740_s9   ;;  %s310_s12 = sand.u32 1, %s1484_s19  }
  0x86   : > { %s972_s3 = sshll.u32 %s310_s12, 7  ;;  %s309_s17 = scalar_lea.sflag [#allocation7], %s308_s7 }
  0x87   : > { %s1863_s23 = scalar_lea.vmem [#allocation6], %s972_s3 }
  0x88   : > { %1455 = dma.done.wait (%p1769_p2), %s309_s17, 4096  }
  0x89   : > { %1457 = vsyncadd (%p1769_p2), %s309_s17, 4294963200  ;;  %s1869_s29 = scalar_lea.vmem [#allocation8], %s972_s3  ;;  %s327_s27 = scalar_lea.sflag [#allocation10], %s310_s12 }
  0x8a   : > { %s1871_s6 = scalar_lea.vmem [#allocation9], %s972_s3 }
  0x8b   : > { %1459 = dma.done.wait (%p1769_p2), %s327_s27, 2048  }
  0x8c   : > { %1461 = vsyncadd (%p1769_p2), %s327_s27, 4294965248  ;;  %s2310_s9 = sld [smem:[#allocation17_spill]] }
  0x8d   : > { %s2311_s28 = sld [smem:[#allocation20_spill]] }
  0x92   : > { %s367_s18 = sand.u32 1, %s2310_s9  }
  0x93   : > { %s975_s14 = sshll.u32 %s367_s18, 4  ;;  %p976_p8 = scmp.ne.s32.totalorder %s2311_s28, 0 }
  0x94   : > { %s1880_s8 = scalar_lea.vmem [#allocation11], %s975_s14 }
  0x95   : > { %379 = sbr.rel (%p976_p8) target bundleno = 156 (0x9c), region = 56 }
  0x9a   : > { %v1537_v0 = vmov 0.0  }
  0x9b   : > { %380 = vst [vmem:[#allocation2] sm:$0xff] %v1537_v0  ;;  %381 = vst [vmem:[#allocation2 + $0x8] sm:$0xff] %v1537_v0 }
  0x9c PF: > { %v1884_v1 = vld [vmem:[%s1869_s29 + $0x70] sm:$0xff]  ;;  %v1887_v2 = vld [vmem:[%s1869_s29 + $0x78] sm:$0xff]  ;;  %v1538_v3 = vmov 0.0   ;;  %vm1539_vm0 = vmmov 0   ;;  %v1894_v8 = vld [vmem:[%s1869_s29 + $0x60] sm:$0xff]  ;;  %s2336_s21 = sld [smem:[#allocation20_spill]] }
  0x9d   : > { %993 = vmatprep.subr.bf16.mxu0 %v1538_v3  ;;  %v428_v4 = vand.u32 2147483647, %v1884_v1  ;;  %v429_v5 = vand.u32 2147483647, %v1887_v2  ;;  %1009 = vmatprep.mubr.msk.bf16.mxu0 %vm1539_vm0, %v1538_v3  ;;  %v1897_v9 = vld [vmem:[%s1869_s29 + $0x68] sm:$0xff]  ;;  %v1902_v16 = vld [vmem:[%s1869_s29 + $0x50] sm:$0xff] }
  0x9e   : > { %v426_v10 = vand.u32 2147483647, %v1894_v8  ;;  %v427_v11 = vand.u32 2147483647, %v1897_v9  ;;  %v1905_v17 = vld [vmem:[%s1869_s29 + $0x58] sm:$0xff]  ;;  %v1910_v23 = vld [vmem:[%s1869_s29 + $0x40] sm:$0xff] }
  0x9f   : > { %v444_v6 = vsub.f32 0.0, %v428_v4  ;;  %v445_v7 = vsub.f32 0.0, %v429_v5  ;;  %v424_v18 = vand.u32 2147483647, %v1902_v16  ;;  %v425_v21 = vand.u32 2147483647, %v1905_v17 }
  0xa0   : > { %v442_v14 = vsub.f32 0.0, %v426_v10  ;;  %v443_v15 = vsub.f32 0.0, %v427_v11  ;;  %v1913_v25 = vld [vmem:[%s1869_s29 + $0x48] sm:$0xff]  ;;  %v422_v26 = vand.u32 2147483647, %v1910_v23  ;;  %v1918_v31 = vld [vmem:[%s1869_s29 + $0x30] sm:$0xff] }
  0xa1   : > { %v474_v12 = vmul.f32 1.442695, %v444_v6  ;;  %v476_v13 = vmul.f32 1.442695, %v445_v7  ;;  %v440_v22 = vsub.f32 0.0, %v424_v18  ;;  %v441_v24 = vsub.f32 0.0, %v425_v21 }
  0xa2   : > { %v470_v19 = vmul.f32 1.442695, %v442_v14  ;;  %v472_v20 = vmul.f32 1.442695, %v443_v15  ;;  %v423_v28 = vand.u32 2147483647, %v1913_v25 }
  0xa3   : > { %1184 = vpow2.f32 %v474_v12  ;;  %v466_v27 = vmul.f32 1.442695, %v440_v22  ;;  %v468_v29 = vmul.f32 1.442695, %v441_v24  ;;  %v438_v30 = vsub.f32 0.0, %v422_v26  ;;  %v1921_v33 = vld [vmem:[%s1869_s29 + $0x38] sm:$0xff] }
  0xa4   : > { %1186 = vpow2.f32 %v476_v13  ;;  %v439_v32 = vsub.f32 0.0, %v423_v28  ;;  %v420_v34 = vand.u32 2147483647, %v1918_v31  ;;  %v421_v36 = vand.u32 2147483647, %v1921_v33  ;;  %v1926_v39 = vld [vmem:[%s1869_s29 + $0x20] sm:$0xff] }
  0xa5   : > { %1188 = vpow2.f32 %v470_v19  ;;  %v462_v35 = vmul.f32 1.442695, %v438_v30  ;;  %v418_v41 = vand.u32 2147483647, %v1926_v39  ;;  %v1930_v43 = vld [vmem:[%s1869_s29 + $0x28] sm:$0xff]  ;;  %v412_v53 = vmax.f32 %v1884_v1, 0.0 }
  0xa6   : > { %1190 = vpow2.f32 %v472_v20  ;;  %v464_v37 = vmul.f32 1.442695, %v439_v32  ;;  %v436_v38 = vsub.f32 0.0, %v420_v34  ;;  %v437_v40 = vsub.f32 0.0, %v421_v36  ;;  %v1938_v58 = vld [vmem:[%s1869_s29 + $0x10] sm:$0xff]  ;;  %v1944_v62 = vld [vmem:[%s1869_s29 + $0x18] sm:$0xff] }
  0xa7   : > { %1192 = vpow2.f32 %v466_v27  ;;  %v434_v45 = vsub.f32 0.0, %v418_v41  ;;  %v419_v47 = vand.u32 2147483647, %v1930_v43  ;;  %v413_v55 = vmax.f32 %v1887_v2, 0.0  ;;  %p977_p6 = scmp.ne.s32.totalorder %s2336_s21, 2 }
  0xa8   : > { %1194 = vpow2.f32 %v468_v29  ;;  %v458_v42 = vmul.f32 1.442695, %v436_v38  ;;  %v460_v44 = vmul.f32 1.442695, %v437_v40  ;;  %v410_v59 = vmax.f32 %v1894_v8, 0.0  ;;  %v653_v40 = vld [vmem:[%s1863_s23 + $0x78] sm:$0xff] }
  0xa9   : > { %1196 = vpow2.f32 %v462_v35  ;;  %v454_v50 = vmul.f32 1.442695, %v434_v45  ;;  %v435_v57 = vsub.f32 0.0, %v419_v47  ;;  %v411_v60 = vmax.f32 %v1897_v9, 0.0 }
  0xaa   : > { %1198 = vpow2.f32 %v464_v37  ;;  %v408_v7 = vmax.f32 %v1902_v16, 0.0  ;;  %v416_v11 = vand.u32 2147483647, %v1938_v58  ;;  %v409_v13 = vmax.f32 %v1905_v17, 0.0 }
  0xab   : > { %1200 = vpow2.f32 %v458_v42  ;;  %v456_v14 = vmul.f32 1.442695, %v435_v57  ;;  %v417_v15 = vand.u32 2147483647, %v1944_v62 }
  0xac   : > { %1202 = vpow2.f32 %v460_v44  ;;  %v1968_v42 = vsub.f32 0.0, %v416_v11 }
  0xb0   : > { %v1185_v46 = vpop.eup %1184 }
  0xb1   : > { %v1187_v48 = vpop.eup %1186  ;;  %v604_v49 = vadd.f32 1.0, %v1185_v46  ;;  %v607_v0 = vmul.f32 -0.5, %v1185_v46  ;;  %v610_v4 = vand.u32 2147483647, %v1185_v46 }
  0xb2   : > { %v613_v51 = vadd.f32 1.0, %v1187_v48  ;;  %v1189_v52 = vpop.eup %1188  ;;  %v616_v5 = vmul.f32 -0.5, %v1187_v48  ;;  %v619_v19 = vand.u32 2147483647, %v1187_v48 }
  0xb3   : > { %1204 = vlog2.f32 %v604_v49  ;;  %v1934_v54 = vpop.eup %1190  ;;  %v586_v56 = vadd.f32 1.0, %v1189_v52  ;;  %v589_v12 = vmul.f32 -0.5, %v1189_v52  ;;  %v608_v24 = vadd.f32 1.0, %v607_v0 }
  0xb4   : > { %1206 = vlog2.f32 %v613_v51  ;;  %v595_v61 = vadd.f32 1.0, %v1934_v54  ;;  %v1193_v63 = vpop.eup %1192  ;;  %v598_v20 = vmul.f32 -0.5, %v1934_v54  ;;  %vm1955_vm1 = vcmp.lt.f32.partialorder %v610_v4, 0.0004427343 }
  0xb5   : > { %1208 = vpow2.f32 %v454_v50  ;;  %v1195_v6 = vpop.eup %1194  ;;  %v568_v10 = vadd.f32 1.0, %v1193_v63  ;;  %v617_v27 = vadd.f32 1.0, %v616_v5  ;;  %v571_v28 = vmul.f32 -0.5, %v1193_v63 }
  0xb6   : > { %1210 = vlog2.f32 %v586_v56  ;;  %v1950_v18 = vpop.eup %1196  ;;  %v577_v21 = vadd.f32 1.0, %v1195_v6  ;;  %v592_v29 = vand.u32 2147483647, %v1189_v52  ;;  %v580_v30 = vmul.f32 -0.5, %v1195_v6 }
  0xb7   : > { %1212 = vlog2.f32 %v595_v61  ;;  %v1953_v22 = vpop.eup %1198  ;;  %v550_v32 = vadd.f32 1.0, %v1950_v18  ;;  %v590_v34 = vadd.f32 1.0, %v589_v12  ;;  %v601_v35 = vand.u32 2147483647, %v1934_v54 }
  0xb8   : > { %1214 = vlog2.f32 %v568_v10  ;;  %v574_v36 = vand.u32 2147483647, %v1193_v63  ;;  %v559_v37 = vadd.f32 1.0, %v1953_v22  ;;  %v1962_v38 = vpop.eup %1200  ;;  %vm1964_vm2 = vcmp.lt.f32.partialorder %v619_v19, 0.0004427343 }
  0xb9   : > { %1216 = vlog2.f32 %v577_v21  ;;  %v599_v41 = vadd.f32 1.0, %v598_v20  ;;  %v1970_v44 = vpop.eup %1202  ;;  %v609_v45 = vmul.f32 %v1185_v46, %v608_v24  ;;  %v572_v47 = vadd.f32 1.0, %v571_v28  ;;  %v665_v24 = vld [vmem:[%s1871_s6 + $0x58] sm:$0xff] }
  0xba   : > { %1218 = vlog2.f32 %v550_v32  ;;  %v583_v49 = vand.u32 2147483647, %v1195_v6  ;;  %v618_v50 = vmul.f32 %v1187_v48, %v617_v27  ;;  %vm1972_vm3 = vcmp.lt.f32.partialorder %v592_v29, 0.0004427343  ;;  %v668_v29 = vld [vmem:[%s1871_s6 + $0x70] sm:$0xff] }
  0xbb   : > { %1220 = vlog2.f32 %v559_v37  ;;  %v581_v56 = vadd.f32 1.0, %v580_v30  ;;  %v553_v57 = vmul.f32 -0.5, %v1950_v18  ;;  %v591_v0 = vmul.f32 %v1189_v52, %v590_v34 }
  0xbc   : > { %vm1977_vm4 = vcmp.lt.f32.partialorder %v601_v35, 0.0004427343  ;;  %vm1981_vm5 = vcmp.lt.f32.partialorder %v574_v36, 0.0004427343  ;;  %v532_v48 = vadd.f32 1.0, %v1962_v38  ;;  %v600_v11 = vmul.f32 %v1934_v54, %v599_v41  ;;  %v669_v36 = vld [vmem:[%s1871_s6 + $0x78] sm:$0xff] }
  0xbd   : > { %v556_v12 = vand.u32 2147483647, %v1950_v18  ;;  %v541_v52 = vadd.f32 1.0, %v1970_v44  ;;  %v573_v21 = vmul.f32 %v1193_v63, %v572_v47  ;;  %vm1991_vm6 = vcmp.lt.f32.partialorder %v583_v49, 0.0004427343  ;;  %v652_v41 = vld [vmem:[%s1863_s23 + $0x70] sm:$0xff] }
  0xbe   : > { %v562_v27 = vmul.f32 -0.5, %v1953_v22  ;;  %v582_v30 = vmul.f32 %v1195_v6, %v581_v56  ;;  %v554_v32 = vadd.f32 1.0, %v553_v57  ;;  %1222 = vpow2.f32 %v456_v14  ;;  %v667_v57 = vld [vmem:[%s1871_s6 + $0x68] sm:$0xff] }
  0xbf   : > { %1224 = vlog2.f32 %v532_v48  ;;  %vm2007_vm7 = vcmp.lt.f32.partialorder %v556_v12, 0.0004427343  ;;  %v544_v9 = vmul.f32 -0.5, %v1970_v44 }
  0xc0   : > { %v1205_v61 = vpop.eup %1204  ;;  %1226 = vlog2.f32 %v541_v52  ;;  %v563_v49 = vadd.f32 1.0, %v562_v27  ;;  %v650_v52 = vld [vmem:[%s1863_s23 + $0x60] sm:$0xff] }
  0xc1   : > { %v1207_v5 = vpop.eup %1206  ;;  %v606_v10 = vmul.f32 0.6931472, %v1205_v61  ;;  %v545_v17 = vadd.f32 1.0, %v544_v9 }
  0xc2   : > { %v1989_v19 = vpop.eup %1208  ;;  %v615_v20 = vmul.f32 0.6931472, %v1207_v5  ;;  %v564_v46 = vmul.f32 %v1953_v22, %v563_v49  ;;  %v648_v49 = vld [vmem:[%s1863_s23 + $0x50] sm:$0xff] }
  0xc3   : > { %v1211_v28 = vpop.eup %1210  ;;  %v612_v54 = vsel %vm1955_vm1, %v609_v45, %v606_v10  ;;  %v514_v2 = vadd.f32 1.0, %v1989_v19  ;;  %v565_v10 = vand.u32 2147483647, %v1953_v22  ;;  %v406_v22 = vmax.f32 %v1910_v23, 0.0 }
  0xc4   : > { %v1213_v34 = vpop.eup %1212  ;;  %v621_v63 = vsel %vm1964_vm2, %v618_v50, %v615_v20  ;;  %v636_v35 = vadd.f32 %v612_v54, %v412_v53  ;;  %v588_v37 = vmul.f32 0.6931472, %v1211_v28  ;;  %v666_v53 = vld [vmem:[%s1871_s6 + $0x60] sm:$0xff]  ;;  %v651_v20 = vld [vmem:[%s1863_s23 + $0x68] sm:$0xff]  ;;  %v535_v28 = vmul.f32 -0.5, %v1962_v38 }
  0xc5   : > { %v637_v26 = vadd.f32 %v621_v63, %v413_v55  ;;  %v597_v45 = vmul.f32 0.6931472, %v1213_v34  ;;  %v1215_v14 = vpop.eup %1214  ;;  %1228 = vlog2.f32 %v514_v2  ;;  %v664_v63 = vld [vmem:[%s1871_s6 + $0x50] sm:$0xff]  ;;  %vm2045_vm8 = vcmp.lt.f32.partialorder %v565_v10, 0.0004427343  ;;  %v649_v2 = vld [vmem:[%s1863_s23 + $0x58] sm:$0xff] }
  0xc6   : > { %v684_v47 = vmul.f32 %v668_v29, %v636_v35  ;;  %v594_v1 = vsel %vm1972_vm3, %v591_v0, %v588_v37  ;;  %v570_v61 = vmul.f32 0.6931472, %v1215_v14  ;;  %v1217_v48 = vpop.eup %1216  ;;  %v555_v0 = vmul.f32 %v1950_v18, %v554_v32 }
  0xc7   : > { %v685_v55 = vmul.f32 %v669_v36, %v637_v26  ;;  %v603_v50 = vsel %vm1977_vm4, %v600_v11, %v597_v45  ;;  %v634_v56 = vadd.f32 %v594_v1, %v410_v59  ;;  %v579_v59 = vmul.f32 0.6931472, %v1217_v48  ;;  %v1219_v4 = vpop.eup %1218 }
  0xc8   : > { %v700_v5 = vadd.f32 %v684_v47, %v652_v41  ;;  %v635_v51 = vadd.f32 %v603_v50, %v411_v60  ;;  %v576_v8 = vsel %vm1981_vm5, %v573_v21, %v570_v61  ;;  %v433_v60 = vsub.f32 0.0, %v417_v15  ;;  %v1221_v18 = vpop.eup %1220 }
  0xc9   : > { %v701_v12 = vadd.f32 %v685_v55, %v653_v40  ;;  %v682_v27 = vmul.f32 %v666_v53, %v634_v56  ;;  %v585_v29 = vsel %vm1991_vm6, %v582_v30, %v579_v59  ;;  %v632_v34 = vadd.f32 %v576_v8, %v408_v7  ;;  %v2062_v55 = vld [vmem:[%s1869_s29] sm:$0xff] }
  0xca   : > { %v683_v11 = vmul.f32 %v667_v57, %v635_v51  ;;  %v552_v35 = vmul.f32 0.6931472, %v1219_v4  ;;  %v633_v15 = vadd.f32 %v585_v29, %v409_v13  ;;  %v561_v36 = vmul.f32 0.6931472, %v1221_v18  ;;  %v2072_v51 = vld [vmem:[%s1869_s29 + $0x8] sm:$0xff] }
  0xcb   : > { %v712_v54 = vpack.c.bf16 %v701_v12, %v700_v5  ;;  %v698_v21 = vadd.f32 %v682_v27, %v650_v52  ;;  %v450_v37 = vmul.f32 1.442695, %v1968_v42  ;;  %v452_v26 = vmul.f32 1.442695, %v433_v60  ;;  %v2050_v13 = vpop.eup %1222  ;;  %v662_v12 = vld [vmem:[%s1871_s6 + $0x40] sm:$0xff]  ;;  %v663_v52 = vld [vmem:[%s1871_s6 + $0x48] sm:$0xff] }
  0xcc   : > { %v699_v32 = vadd.f32 %v683_v11, %v651_v20  ;;  %v536_v16 = vadd.f32 1.0, %v535_v28  ;;  %v538_v7 = vand.u32 2147483647, %v1962_v38  ;;  %v680_v42 = vmul.f32 %v664_v63, %v632_v34  ;;  %v1225_v45 = vpop.eup %1224 }
  0xcd   : > { %994 = vmatpush3.bf16.xpose.msra.mxu0 %v712_v54  ;;  %1230 = vpow2.f32 %v450_v37  ;;  %v407_v41 = vmax.f32 %v1913_v25, 0.0  ;;  %v558_v23 = vsel %vm2007_vm7, %v555_v0, %v552_v35  ;;  %v681_v40 = vmul.f32 %v665_v24, %v633_v15  ;;  %v1227_v53 = vpop.eup %1226 }
  0xce   : > { %995 = vmatprep.subr.bf16.mxu0 %v1538_v3  ;;  %1232 = vpow2.f32 %v452_v26  ;;  %v711_v14 = vpack.c.bf16 %v699_v32, %v698_v21  ;;  %v567_v47 = vsel %vm2045_vm8, %v564_v46, %v561_v36  ;;  %v523_v1 = vadd.f32 1.0, %v2050_v13  ;;  %v647_v46 = vld [vmem:[%s1863_s23 + $0x48] sm:$0xff] }
  0xcf   : > { %v547_v25 = vand.u32 2147483647, %v1970_v44  ;;  %v537_v6 = vmul.f32 %v1962_v38, %v536_v16  ;;  %vm2065_vm9 = vcmp.lt.f32.partialorder %v538_v7, 0.0004427343  ;;  %v546_v56 = vmul.f32 %v1970_v44, %v545_v17  ;;  %v660_v16 = vld [vmem:[%s1871_s6 + $0x30] sm:$0xff] }
  0xd0   : > { %v517_v57 = vmul.f32 -0.5, %v1989_v19  ;;  %v630_v61 = vadd.f32 %v558_v23, %v406_v22  ;;  %v631_v48 = vadd.f32 %v567_v47, %v407_v41  ;;  %v534_v5 = vmul.f32 0.6931472, %v1225_v45 }
  0xd1   : > { %1234 = vlog2.f32 %v523_v1  ;;  %v696_v0 = vadd.f32 %v680_v42, %v648_v49  ;;  %v697_v10 = vadd.f32 %v681_v40, %v649_v2  ;;  %v543_v38 = vmul.f32 0.6931472, %v1227_v53 }
  0xd2   : > { %v414_v20 = vand.u32 2147483647, %v2062_v55  ;;  %v404_v44 = vmax.f32 %v1918_v31, 0.0  ;;  %vm2079_vm10 = vcmp.lt.f32.partialorder %v547_v25, 0.0004427343  ;;  %v405_v8 = vmax.f32 %v1921_v33, 0.0  ;;  %v1229_v28 = vpop.eup %1228 }
  0xd3   : > { %v518_v59 = vadd.f32 1.0, %v517_v57  ;;  %v415_v4 = vand.u32 2147483647, %v2072_v51  ;;  %v678_v9 = vmul.f32 %v662_v12, %v630_v61  ;;  %v679_v60 = vmul.f32 %v663_v52, %v631_v48  ;;  %v646_v31 = vld [vmem:[%s1863_s23 + $0x40] sm:$0xff]  ;;  %v644_v25 = vld [vmem:[%s1863_s23 + $0x30] sm:$0xff] }
  0xd4   : > { %v430_v11 = vsub.f32 0.0, %v414_v20  ;;  %v540_v18 = vsel %vm2065_vm9, %v537_v6, %v534_v5  ;;  %v526_v54 = vmul.f32 -0.5, %v2050_v13  ;;  %v710_v29 = vpack.c.bf16 %v697_v10, %v696_v0  ;;  %v645_v6 = vld [vmem:[%s1863_s23 + $0x38] sm:$0xff]  ;;  %v658_v5 = vld [vmem:[%s1871_s6 + $0x20] sm:$0xff]  ;;  %v659_v0 = vld [vmem:[%s1871_s6 + $0x28] sm:$0xff] }
  0xd5   : > { %996 = vmatpush3.bf16.xpose.msra.mxu0 %v711_v14  ;;  %v549_v21 = vsel %vm2079_vm10, %v546_v56, %v543_v38  ;;  %v431_v33 = vsub.f32 0.0, %v415_v4  ;;  %v520_v34 = vand.u32 2147483647, %v1989_v19  ;;  %v628_v63 = vadd.f32 %v540_v18, %v404_v44 }
  0xd6   : > { %997 = vmatprep.subr.bf16.mxu0 %v1538_v3  ;;  %v446_v32 = vmul.f32 1.442695, %v430_v11  ;;  %v519_v35 = vmul.f32 %v1989_v19, %v518_v59  ;;  %v694_v37 = vadd.f32 %v678_v9, %v646_v31  ;;  %v695_v26 = vadd.f32 %v679_v60, %v647_v46  ;;  %v661_v19 = vld [vmem:[%s1871_s6 + $0x38] sm:$0xff]  ;;  %v642_v11 = vld [vmem:[%s1863_s23 + $0x20] sm:$0xff] }
  0xd7   : > { %v448_v15 = vmul.f32 1.442695, %v431_v33  ;;  %v629_v24 = vadd.f32 %v549_v21, %v405_v8  ;;  %v527_v22 = vadd.f32 1.0, %v526_v54  ;;  %v516_v7 = vmul.f32 0.6931472, %v1229_v28  ;;  %v643_v28 = vld [vmem:[%s1863_s23 + $0x28] sm:$0xff] }
  0xd8   : > { %1236 = vpow2.f32 %v446_v32  ;;  %v529_v17 = vand.u32 2147483647, %v2050_v13  ;;  %vm2098_vm11 = vcmp.lt.f32.partialorder %v520_v34, 0.0004427343  ;;  %v402_v45 = vmax.f32 %v1926_v39, 0.0 }
  0xd9   : > { %1238 = vpow2.f32 %v448_v15  ;;  %v676_v14 = vmul.f32 %v660_v16, %v628_v63  ;;  %v403_v40 = vmax.f32 %v1930_v43, 0.0  ;;  %v528_v47 = vmul.f32 %v2050_v13, %v527_v22  ;;  %v656_v63 = vld [vmem:[%s1871_s6 + $0x10] sm:$0xff] }
  0xda   : > { %v1231_v36 = vpop.eup %1230  ;;  %v709_v53 = vpack.c.bf16 %v695_v26, %v694_v37  ;;  %v677_v49 = vmul.f32 %v661_v19, %v629_v24  ;;  %v522_v2 = vsel %vm2098_vm11, %v519_v35, %v516_v7  ;;  %vm530_vm12 = vcmp.lt.f32.partialorder %v529_v17, 0.0004427343  ;;  %v657_v37 = vld [vmem:[%s1871_s6 + $0x18] sm:$0xff]  ;;  %v640_v22 = vld [vmem:[%s1863_s23 + $0x10] sm:$0xff] }
  0xdb   : > { %v1233_v30 = vpop.eup %1232  ;;  %v496_v42 = vadd.f32 1.0, %v1231_v36  ;;  %v499_v39 = vmul.f32 -0.5, %v1231_v36  ;;  %v626_v57 = vadd.f32 %v522_v2, %v402_v45  ;;  %v692_v43 = vadd.f32 %v676_v14, %v644_v25 }
  0xdc   : > { %v505_v23 = vadd.f32 1.0, %v1233_v30  ;;  %v508_v61 = vmul.f32 -0.5, %v1233_v30  ;;  %v693_v13 = vadd.f32 %v677_v49, %v645_v6  ;;  %v502_v38 = vand.u32 2147483647, %v1231_v36 }
  0xdd   : > { %998 = vmatpush3.bf16.xpose.msra.mxu0 %v710_v29  ;;  %1240 = vlog2.f32 %v496_v42  ;;  %v500_v10 = vadd.f32 1.0, %v499_v39  ;;  %v674_v52 = vmul.f32 %v658_v5, %v626_v57  ;;  %v511_v8 = vand.u32 2147483647, %v1233_v30  ;;  %v654_v39 = vld [vmem:[%s1871_s6] sm:$0xff]  ;;  %v639_v5 = vld [vmem:[%s1863_s23 + $0x8] sm:$0xff] }
  0xde   : > { %999 = vmatprep.subr.bf16.mxu0 %v1538_v3  ;;  %1242 = vlog2.f32 %v505_v23  ;;  %v1235_v1 = vpop.eup %1234  ;;  %v509_v20 = vadd.f32 1.0, %v508_v61  ;;  %v708_v44 = vpack.c.bf16 %v693_v13, %v692_v43  ;;  %v400_v9 = vmax.f32 %v1938_v58, 0.0  ;;  %v638_v61 = vld [vmem:[%s1863_s23] sm:$0xff]  ;;  %v655_v43 = vld [vmem:[%s1871_s6 + $0x8] sm:$0xff] }
  0xdf   : > { %v525_v50 = vmul.f32 0.6931472, %v1235_v1  ;;  %v501_v60 = vmul.f32 %v1231_v36, %v500_v10  ;;  %v401_v54 = vmax.f32 %v1944_v62, 0.0  ;;  %vm2116_vm13 = vcmp.lt.f32.partialorder %v502_v38, 0.0004427343  ;;  %v703_v38 = vld [vmem:[%s303_s11 + $0x8] sm:$0xff] }
  0xe0   : > { %v510_v31 = vmul.f32 %v1233_v30, %v509_v20  ;;  %v690_v33 = vadd.f32 %v674_v52, %v642_v11  ;;  %vm512_vm14 = vcmp.lt.f32.partialorder %v511_v8, 0.0004427343  ;;  %v641_v30 = vld [vmem:[%s1863_s23 + $0x18] sm:$0xff]  ;;  %v398_v1 = vmax.f32 %v2062_v55, 0.0  ;;  %v702_v52 = vld [vmem:[%s303_s11] sm:$0xff] }
  0xe1   : > { %v531_v56 = vsel %vm530_vm12, %v528_v47, %v525_v50  ;;  %v399_v6 = vmax.f32 %v2072_v51, 0.0  ;;  %v704_v20 = vpack.c.bf16 %v703_v38, %v702_v52 }
  0xe2   : > { %v627_v48 = vadd.f32 %v531_v56, %v403_v40 }
  0xe4   : > { %v675_v27 = vmul.f32 %v659_v0, %v627_v48 }
  0xe5   : > { %1000 = vmatpush3.bf16.xpose.msra.mxu0 %v709_v53  ;;  %v1237_v12 = vpop.eup %1236 }
  0xe6   : > { %1001 = vmatprep.subr.bf16.mxu0 %v1538_v3  ;;  %v478_v59 = vadd.f32 1.0, %v1237_v12  ;;  %v1239_v4 = vpop.eup %1238  ;;  %v691_v32 = vadd.f32 %v675_v27, %v643_v28  ;;  %v481_v35 = vmul.f32 -0.5, %v1237_v12  ;;  %v484_v19 = vand.u32 2147483647, %v1237_v12 }
  0xe7   : > { %v487_v46 = vadd.f32 1.0, %v1239_v4  ;;  %v490_v7 = vmul.f32 -0.5, %v1239_v4  ;;  %v493_v40 = vand.u32 2147483647, %v1239_v4 }
  0xe8   : > { %1244 = vlog2.f32 %v478_v59  ;;  %v707_v26 = vpack.c.bf16 %v691_v32, %v690_v33  ;;  %v482_v42 = vadd.f32 1.0, %v481_v35  ;;  %vm485_vm15 = vcmp.lt.f32.partialorder %v484_v19, 0.0004427343  ;;  %v714_v59 = vld [vmem:[#allocation2 + $0x8] sm:$0xff] }
  0xe9   : > { %1246 = vlog2.f32 %v487_v46  ;;  %v491_v45 = vadd.f32 1.0, %v490_v7  ;;  %vm494_vm0 = vcmp.lt.f32.partialorder %v493_v40, 0.0004427343 }
  0xea   : > { %v1241_v18 = vpop.eup %1240  ;;  %v483_v14 = vmul.f32 %v1237_v12, %v482_v42 }
  0xeb   : > { %v1243_v21 = vpop.eup %1242  ;;  %v498_v58 = vmul.f32 0.6931472, %v1241_v18  ;;  %v492_v2 = vmul.f32 %v1239_v4, %v491_v45 }
  0xec   : > { %v507_v34 = vmul.f32 0.6931472, %v1243_v21 }
  0xed   : > { %1002 = vmatpush3.bf16.xpose.msra.mxu0 %v708_v44  ;;  %v504_v62 = vsel %vm2116_vm13, %v501_v60, %v498_v58  ;;  %v713_v44 = vld [vmem:[#allocation2] sm:$0xff] }
  0xee   : > { %1003 = vmatprep.subr.bf16.mxu0 %v1538_v3  ;;  %v513_v15 = vsel %vm512_vm14, %v510_v31, %v507_v34  ;;  %v624_v36 = vadd.f32 %v504_v62, %v400_v9 }
  0xef   : > { %v625_v24 = vadd.f32 %v513_v15, %v401_v54 }
  0xf0   : > { %v672_v16 = vmul.f32 %v656_v63, %v624_v36 }
  0xf1   : > { %v673_v17 = vmul.f32 %v657_v37, %v625_v24 }
  0xf2   : > { %v688_v41 = vadd.f32 %v672_v16, %v640_v22 }
  0xf3   : > { %v689_v23 = vadd.f32 %v673_v17, %v641_v30 }
  0xf5   : > { %1004 = vmatpush3.bf16.xpose.msra.mxu0 %v707_v26  ;;  %v1245_v47 = vpop.eup %1244  ;;  %v706_v53 = vpack.c.bf16 %v689_v23, %v688_v41 }
  0xf6   : > { %1005 = vmatprep.subr.bf16.mxu0 %v1538_v3  ;;  %v480_v49 = vmul.f32 0.6931472, %v1245_v47  ;;  %v1247_v25 = vpop.eup %1246 }
  0xf7   : > { %v489_v56 = vmul.f32 0.6931472, %v1247_v25 }
  0xf8   : > { %v486_v50 = vsel %vm485_vm15, %v483_v14, %v480_v49 }
  0xf9   : > { %v622_v57 = vadd.f32 %v486_v50, %v398_v1  ;;  %v495_v55 = vsel %vm494_vm0, %v492_v2, %v489_v56 }
  0xfa   : > { %v623_v48 = vadd.f32 %v495_v55, %v399_v6 }
  0xfb   : > { %v670_v13 = vmul.f32 %v654_v39, %v622_v57 }
  0xfc   : > { %v671_v0 = vmul.f32 %v655_v43, %v623_v48 }
  0xfd   : > { %1006 = vmatpush3.bf16.xpose.msra.mxu0 %v706_v53  ;;  %v686_v10 = vadd.f32 %v670_v13, %v638_v61 }
  0xfe   : > { %1007 = vmatprep.subr.bf16.mxu0 %v1538_v3  ;;  %v687_v12 = vadd.f32 %v671_v0, %v639_v5 }
 0x100   : > { %v705_v51 = vpack.c.bf16 %v687_v12, %v686_v10 }
 0x105   : > { %1008 = vmatpush3.bf16.xpose.msra.mxu0 %v705_v51 }
 0x10c   : > { %1010 = vmatmul.mubr.bf16.vlgmr.msra.gmra.mxu0 %v704_v20 }
 0x1cc   : > { %v749_v27 = vpop.f32.mrf.mxu0 }
 0x1cd   : > { %v756_v3 = vadd.f32 %v749_v27, %v713_v44 }
 0x1ce   : > { %v1011_v8 = vpop.f32.mrf.mxu0 }
 0x1cf   : > { %758 = vst [vmem:[#allocation2] sm:$0xff] %v756_v3  ;;  %763 = sbr.rel (%p977_p6) target bundleno = 476 (0x1dc), region = 60 }
 0x1d0   : > { %v752_v4 = vpop.f32.mrf.mxu0 }
 0x1d1   : > { %v757_v11 = vadd.f32 %v752_v4, %v714_v59 }
 0x1d2   : > { %v1012_v28 = vpop.f32.mrf.mxu0 }
 0x1d3   : > { %759 = vst [vmem:[#allocation2 + $0x8] sm:$0xff] %v757_v11 }
 0x1d6   : > { %v764_v9 = vld [vmem:[#allocation2] sm:$0xff] }
 0x1d7   : > { %766 = vst [vmem:[%s1880_s8] sm:$0xff] %v764_v9 }
 0x1da   : > { %v765_v60 = vld [vmem:[#allocation2 + $0x8] sm:$0xff] }
 0x1db   : > { %767 = vst [vmem:[%s1880_s8 + $0x8] sm:$0xff] %v765_v60 }
 0x1dc PF: > { %s2337_s15 = sld [smem:[#allocation22_spill]]  ;;  %s784_s0 = sshll.u32 %s1880_s8, 4  ;;  %s2145_s0 = int_to_ptr.vmem [resolvable:$true] %s784_s0 }
 0x1dd   : > { %s2338_s1 = sld [smem:[#allocation21_spill]]  ;;  %s2154_s12 = scalar_lea.sflag [#allocation5], %s367_s18 }
 0x1de   : > { %s2340_s5 = sld [smem:[#allocation32_spill]]  ;;  %s1360_s3 = scalar_lea.vmem %s2145_s0, 256 }
 0x1df   : > { %s2341_s26 = sld [smem:[#allocation38_spill]]  ;;  %p1361_p4 = scmp.ne.s32.totalorder %s2145_s0, %s1360_s3 }
 0x1e0   : > { %s1540_s17 = smov [#allocation11]  }
 0x1e1   : > { %s1364_s23 = sshll.u32 %s1540_s17, 4  ;;  %s1365_s23 = int_to_ptr.vmem [resolvable:$false] %s1364_s23 }
 0x1e2   : > { %s1017_s2 = smul.u32 6, %s2337_s15  ;;  %s1366_s29 = scalar_lea.vmem %s1365_s23, 512 }
 0x1e3   : > { %p1367_p5 = scmp.lt.s32.totalorder %s2145_s0, %s1365_s23  ;;  %p1368_p3 = scmp.lt.s32.totalorder %s1366_s29, %s1360_s3 }
 0x1e4   : > { %s781_s10 = sadd.s32 %s2338_s1, %s1017_s2  ;;  %p2343_p2 = scmp.ne.s32.totalorder %s2340_s5, 0 }
 0x1e5   : > { %s981_s16 = sshll.u32 %s781_s10, 7  ;;  %s2342_s11 = smov %s2341_s26 }
 0x1e6   : > { %s2150_s7 = scalar_lea.hbm %s2341_s26, %s981_s16  ;;  %p1362_p9 = pnand %p1361_p4, %p2343_p2 }
 0x1e7   : > { %p1369_p1 = por %p1368_p3, %p1367_p5 }
 0x1e8   : > { %p1363_p0 = pneg %p1362_p9 }
 0x1ea   : > { %p1370_p7 = pnand %p1369_p1, %p1363_p0 }
 0x1ec   : > { %1373 = shalt.err (!%p1370_p7)
}
 0x1ed   : > { %s1374_s27 = scalar_lea.hbm %s2150_s7, 256  ;;  %s1378_s18 = scalar_lea.hbm %s2342_s11, 1536 }
 0x1ee   : > { %p1375_p12 = scmp.ne.s32.totalorder %s2150_s7, %s1374_s27  ;;  %p1379_p13 = scmp.lt.s32.totalorder %s2150_s7, %s2342_s11 }
 0x1ef   : > { %p1380_p8 = scmp.lt.s32.totalorder %s1378_s18, %s1374_s27 }
 0x1f0   : > { %p1376_p10 = pnand %p1375_p12, %p2343_p2 }
 0x1f1   : > { %p1381_p6 = por %p1380_p8, %p1379_p13 }
 0x1f2   : > { %p1377_p11 = pneg %p1376_p10 }
 0x1f4   : > { %p1382_p4 = pnand %p1381_p6, %p1377_p11 }
 0x1f6   : > { %1385 = shalt.err (!%p1382_p4)
}
 0x1f7   : > { %s1541_s28 = smov 128   ;;  %s1542_s21 = smov 384  }
 0x1f8   : > { %s1543_s15 = smov 8  }
 0x1f9   : > { %1026 = dma.vmem_to_hbm [thread:$0]  (%p2343_p2), %s2145_s0, 256, %s2150_s7, %s2154_s12, %s1541_s28, %s1542_s21, %s1543_s15  }
 0x1fa PF: > { %s2344_s1 = sld [smem:[#allocation16_spill]]  ;;  %p1046_p9 = scmp.ge.s32.totalorder %s1528_s30, 2 }
 0x1fb   : > { %s2345_s13 = sld [smem:[#allocation33_spill]] }
 0x200   : > { %s799_s2 = sand.u32 1, %s2344_s1  }
 0x201   : > { %p2346_p0 = scmp.ne.s32.totalorder %s2345_s13, 0  ;;  %s800_s10 = scalar_lea.sflag [#allocation5], %s799_s2 }
 0x203   : > { %p1042_p5 = pnand %p1046_p9, %p2346_p0 }
 0x205   : > { %p1043_p3 = pneg %p1042_p5 }
 0x207   : > { %1463 = dma.done.wait (%p1043_p3), %s800_s10, 256  }
 0x208   : > { %1465 = vsyncadd (%p1043_p3), %s800_s10, 4294967040  ;;  %s26_s30 = sadd.s32 1, %s1528_s30   ;;  %s2348_s15 = sld [smem:[#allocation17_spill]] }
 0x209   : > { %p2182_p1 = scmp.ge.s32.totalorder %s26_s30, 20   ;;  %s2349_s5 = sld [smem:[#allocation18_spill]] }
 0x20a   : > { %s2350_s17 = sld [smem:[#allocation31_spill]]  ;;  %s2362_s18 = smov %s1484_s19 }
 0x20b   : > { %s2351_s0 = sld [smem:[#allocation28_spill]]  ;;  %s2363_s19 = smov %s1488_s20 }
 0x20c   : > { %s2352_s24 = sld [smem:[#allocation19_spill]]  ;;  %s2365_s21 = smov %s1496_s22 }
 0x20d   : > { %s2353_s23 = sld [smem:[#allocation30_spill]] }
 0x20e   : > { %s2354_s25 = sld [smem:[#allocation23_spill]] }
 0x20f   : > { %s2355_s26 = sld [smem:[#allocation24_spill]]  ;;  %s2361_s16 = smov %s2349_s5 }
 0x210   : > { %s2356_s7 = sld [smem:[#allocation25_spill]] }
 0x211   : > { %s2357_s27 = sld [smem:[#allocation26_spill]]  ;;  %s2364_s20 = smov %s2351_s0 }
 0x212   : > { %s2358_s28 = sld [smem:[#allocation27_spill]]  ;;  %s2366_s22 = smov %s2352_s24 }
 0x213   : > { %s2359_s29 = sld [smem:[#allocation29_spill]]  ;;  %25 = sbr.rel (!%p2182_p1) target bundleno = 21 (0x15), region = 126 }
 0x214   : > { %s2367_s24 = smov %s2354_s25 }
 0x215   : > { %s2368_s25 = smov %s2355_s26 }
 0x216   : > { %s2369_s26 = smov %s2356_s7 }
 0x218   :  { %805 = vsyncpa [#allocation4], 1 }
 0x219   :  { %807 = vsyncpa [#allocation4 + $0x1], 1 }
 0x21a   :  { %808 = vsyncpa [#allocation7], 1 }
 0x21b   :  { %810 = vsyncpa [#allocation7 + $0x1], 1 }
 0x21c   :  { %811 = vsyncpa [#allocation10], 1 }
 0x21d   :  { %813 = vsyncpa [#allocation10 + $0x1], 1 }
 0x21e   :  { %814 = vsyncpa [#allocation5], 1 }
 0x21f   :  { %816 = vsyncpa [#allocation5 + $0x1], 1 }

</bundles_post_ra>
